<compile_context>
chip_gen: v7x
topology: tpu7x:2x2x1
jax: 0.10.0
libtpu: 0.0.40
codegen_flags: <defaults>
</compile_context>

<pallas_src>
import jax
import jax.numpy as jnp
from jax.experimental import pallas as pl
from jax.experimental.pallas import tpu as pltpu


def _kqm_kernel(x_ref, w_ref, shift_ref, o_ref):
    # x_ref:     (1, Cin, TM)  VMEM activation tile (lane axis = spatial)
    # w_ref:     (Cout, Cin)   SMEM folded weights (conv weight * BN scale)
    # shift_ref: (Cout,)       SMEM folded shift   ((bias - mean)*scale + beta)
    # o_ref:     (1, Cout, TM) VMEM output tile
    cin = x_ref.shape[1]
    cout = o_ref.shape[1]

    x = x_ref[0].astype(jnp.float32)  # (Cin, TM), f32 compute (bf16-safe on v5e)

    rows = []
    for co in range(cout):            # fully unrolled: cout, cin are tiny statics
        acc = shift_ref[co] + w_ref[co, 0] * x[0:1, :]
        for ci in range(1, cin):
            acc = acc + w_ref[co, ci] * x[ci:ci + 1, :]
        rows.append(jnp.maximum(acc, 0.0))

    o_ref[0] = jnp.concatenate(rows, axis=0).astype(o_ref.dtype)


def _pick_tile(hw: int) -> int:
    """Largest lane-dense tile (multiple of 128) dividing H*W, capped at 2048."""
    if hw % 128 != 0:
        return hw  # full extent is allowed by the (8,128) rule
    for tm in (2048, 1024, 512, 256, 128):
        if hw % tm == 0:
            return tm
    return hw


def key_query_map_forward(x_nchw, conv_w, conv_b, bn_gamma, bn_beta,
                          bn_mean, bn_var, eps=1e-5):
    """x_nchw: (N, C, H, W). conv_w: (Cout, Cin, 1, 1). Returns (N, Cout, H, W)."""
    N, C, H, W = x_nchw.shape
    Cout = conv_w.shape[0]
    HW = H * W

    # NCHW is already channels-first: no transpose, just flatten spatial dims.
    x3 = x_nchw.reshape(N, C, HW)

    # Fold conv bias + inference-mode BN into per-out-channel weight/shift.
    scale = bn_gamma / jnp.sqrt(bn_var + eps)                          # (Cout,)
    w_fold = (conv_w.reshape(Cout, C) * scale[:, None]).astype(jnp.float32)
    shift_fold = ((conv_b - bn_mean) * scale + bn_beta).astype(jnp.float32)

    TM = _pick_tile(HW)
    grid = (N, HW // TM)

    itemsize = jnp.dtype(x_nchw.dtype).itemsize
    cost = pl.CostEstimate(
        flops=2 * N * HW * C * Cout,
        transcendentals=0,
        bytes_accessed=N * HW * (C + Cout) * itemsize + (Cout * C + Cout) * 4,
    )

    out3 = pl.pallas_call(
        _kqm_kernel,
        out_shape=jax.ShapeDtypeStruct((N, Cout, HW), x_nchw.dtype),
        grid_spec=pltpu.PrefetchScalarGridSpec(
            num_scalar_prefetch=0,
            grid=grid,
            in_specs=[
                pl.BlockSpec((1, C, TM), lambda n, i: (n, 0, i)),
                pl.BlockSpec(memory_space=pltpu.MemorySpace.SMEM),   # w_fold
                pl.BlockSpec(memory_space=pltpu.MemorySpace.SMEM),   # shift_fold
            ],
            out_specs=pl.BlockSpec((1, Cout, TM), lambda n, i: (n, 0, i)),
        ),
        compiler_params=pltpu.CompilerParams(
            dimension_semantics=("parallel", "parallel"),
            vmem_limit_bytes=16 * 1024 * 1024,
        ),
        cost_estimate=cost,
    )(x3, w_fold, shift_fold)

    return out3.reshape(N, Cout, H, W)


if __name__ == "__main__":
    # Module config: channels=4, m=2 -> Cout = channels // m = 2
    N, C, H, W = 2, 4, 16, 16
    m = 2
    Cout = C // m

    key = jax.random.PRNGKey(0)
    k_x, k_w, k_b, k_g, k_bt, k_mu, k_var = jax.random.split(key, 7)

    x = jax.random.normal(k_x, (N, C, H, W), dtype=jnp.float32)

    # Deterministic parameter init (synthetic, matching PyTorch shapes).
    conv_w = jax.random.normal(k_w, (Cout, C, 1, 1), dtype=jnp.float32) * 0.1
    conv_b = jax.random.normal(k_b, (Cout,), dtype=jnp.float32) * 0.1
    bn_gamma = 1.0 + 0.1 * jax.random.normal(k_g, (Cout,), dtype=jnp.float32)
    bn_beta = 0.1 * jax.random.normal(k_bt, (Cout,), dtype=jnp.float32)
    bn_mean = 0.1 * jax.random.normal(k_mu, (Cout,), dtype=jnp.float32)
    bn_var = 1.0 + 0.1 * jax.random.uniform(k_var, (Cout,), dtype=jnp.float32)

    out = key_query_map_forward(x, conv_w, conv_b, bn_gamma, bn_beta,
                                bn_mean, bn_var)
    jax.block_until_ready(out)

    # Lightweight sanity check vs. plain-JAX reference (unfused math/order).
    x_flat = jnp.transpose(x, (0, 2, 3, 1)).reshape(-1, C)
    w_mat = jnp.transpose(conv_w.reshape(Cout, C), (1, 0))
    y_ref = x_flat @ w_mat + conv_b
    y_ref = (y_ref - bn_mean) / jnp.sqrt(bn_var + 1e-5) * bn_gamma + bn_beta
    y_ref = jnp.maximum(y_ref, 0.0).reshape(N, H, W, Cout)
    y_ref = jnp.transpose(y_ref, (0, 3, 1, 2))
    assert out.shape == (N, Cout, H, W)
    assert jnp.allclose(out, y_ref, atol=1e-4, rtol=1e-4)

    print("KERNEL_OK")
</pallas_src>

<mosaic_0001>
module attributes {stable_mosaic.version = 11 : i64} {
  func.func @_kqm_kernel(%arg0: i32, %arg1: i32, %arg2: memref<1x4x256xf32, #tpu.memory_space<vmem>>, %arg3: memref<2x4xf32, #tpu.memory_space<smem>>, %arg4: memref<2xf32, #tpu.memory_space<smem>>, %arg5: memref<1x2x256xf32, #tpu.memory_space<vmem>>) attributes {dimension_semantics = [#tpu.dimension_semantics<parallel>, #tpu.dimension_semantics<parallel>], iteration_bounds = array<i64: 2, 1>, scalar_prefetch = 0 : i64, scratch_operands = 0 : i64, tpu.core_type = #tpu.core_type<tc>, window_params = [{transform_indices = @transform_0, window_bounds = array<i64: 1, 4, 256>}, {transform_indices = @transform_1, window_bounds = array<i64: 2, 4>}, {transform_indices = @transform_2, window_bounds = array<i64: 2>}, {transform_indices = @transform_3, window_bounds = array<i64: 1, 2, 256>}]} {
    %c0 = arith.constant 0 : index
    %c0_0 = arith.constant 0 : index
    %c0_1 = arith.constant 0 : index
    %0 = vector.load %arg2[%c0, %c0_0, %c0_1] : memref<1x4x256xf32, #tpu.memory_space<vmem>>, vector<1x4x256xf32>
    %1 = vector.shape_cast %0 : vector<1x4x256xf32> to vector<4x256xf32>
    %c0_2 = arith.constant 0 : index
    %2 = memref.load %arg4[%c0_2] : memref<2xf32, #tpu.memory_space<smem>>
    %c0_3 = arith.constant 0 : index
    %c0_4 = arith.constant 0 : index
    %3 = memref.load %arg3[%c0_3, %c0_4] : memref<2x4xf32, #tpu.memory_space<smem>>
    %4 = vector.extract_strided_slice %1 {offsets = [0, 0], sizes = [1, 256], strides = [1, 1]} : vector<4x256xf32> to vector<1x256xf32>
    %5 = vector.broadcast %3 : f32 to vector<1x256xf32>
    %6 = arith.mulf %5, %4 : vector<1x256xf32>
    %7 = vector.broadcast %2 : f32 to vector<1x256xf32>
    %8 = arith.addf %7, %6 : vector<1x256xf32>
    %c0_5 = arith.constant 0 : index
    %c1 = arith.constant 1 : index
    %9 = memref.load %arg3[%c0_5, %c1] : memref<2x4xf32, #tpu.memory_space<smem>>
    %10 = vector.extract_strided_slice %1 {offsets = [1, 0], sizes = [1, 256], strides = [1, 1]} : vector<4x256xf32> to vector<1x256xf32>
    %11 = vector.broadcast %9 : f32 to vector<1x256xf32>
    %12 = arith.mulf %11, %10 : vector<1x256xf32>
    %13 = arith.addf %8, %12 : vector<1x256xf32>
    %c0_6 = arith.constant 0 : index
    %c2 = arith.constant 2 : index
    %14 = memref.load %arg3[%c0_6, %c2] : memref<2x4xf32, #tpu.memory_space<smem>>
    %15 = vector.extract_strided_slice %1 {offsets = [2, 0], sizes = [1, 256], strides = [1, 1]} : vector<4x256xf32> to vector<1x256xf32>
    %16 = vector.broadcast %14 : f32 to vector<1x256xf32>
    %17 = arith.mulf %16, %15 : vector<1x256xf32>
    %18 = arith.addf %13, %17 : vector<1x256xf32>
    %c0_7 = arith.constant 0 : index
    %c3 = arith.constant 3 : index
    %19 = memref.load %arg3[%c0_7, %c3] : memref<2x4xf32, #tpu.memory_space<smem>>
    %20 = vector.extract_strided_slice %1 {offsets = [3, 0], sizes = [1, 256], strides = [1, 1]} : vector<4x256xf32> to vector<1x256xf32>
    %21 = vector.broadcast %19 : f32 to vector<1x256xf32>
    %22 = arith.mulf %21, %20 : vector<1x256xf32>
    %23 = arith.addf %18, %22 : vector<1x256xf32>
    %cst = arith.constant 0.000000e+00 : f32
    %24 = vector.broadcast %cst : f32 to vector<1x256xf32>
    %25 = arith.maximumf %23, %24 : vector<1x256xf32>
    %c1_8 = arith.constant 1 : index
    %26 = memref.load %arg4[%c1_8] : memref<2xf32, #tpu.memory_space<smem>>
    %c1_9 = arith.constant 1 : index
    %c0_10 = arith.constant 0 : index
    %27 = memref.load %arg3[%c1_9, %c0_10] : memref<2x4xf32, #tpu.memory_space<smem>>
    %28 = vector.extract_strided_slice %1 {offsets = [0, 0], sizes = [1, 256], strides = [1, 1]} : vector<4x256xf32> to vector<1x256xf32>
    %29 = vector.broadcast %27 : f32 to vector<1x256xf32>
    %30 = arith.mulf %29, %28 : vector<1x256xf32>
    %31 = vector.broadcast %26 : f32 to vector<1x256xf32>
    %32 = arith.addf %31, %30 : vector<1x256xf32>
    %c1_11 = arith.constant 1 : index
    %c1_12 = arith.constant 1 : index
    %33 = memref.load %arg3[%c1_11, %c1_12] : memref<2x4xf32, #tpu.memory_space<smem>>
    %34 = vector.extract_strided_slice %1 {offsets = [1, 0], sizes = [1, 256], strides = [1, 1]} : vector<4x256xf32> to vector<1x256xf32>
    %35 = vector.broadcast %33 : f32 to vector<1x256xf32>
    %36 = arith.mulf %35, %34 : vector<1x256xf32>
    %37 = arith.addf %32, %36 : vector<1x256xf32>
    %c1_13 = arith.constant 1 : index
    %c2_14 = arith.constant 2 : index
    %38 = memref.load %arg3[%c1_13, %c2_14] : memref<2x4xf32, #tpu.memory_space<smem>>
    %39 = vector.extract_strided_slice %1 {offsets = [2, 0], sizes = [1, 256], strides = [1, 1]} : vector<4x256xf32> to vector<1x256xf32>
    %40 = vector.broadcast %38 : f32 to vector<1x256xf32>
    %41 = arith.mulf %40, %39 : vector<1x256xf32>
    %42 = arith.addf %37, %41 : vector<1x256xf32>
    %c1_15 = arith.constant 1 : index
    %c3_16 = arith.constant 3 : index
    %43 = memref.load %arg3[%c1_15, %c3_16] : memref<2x4xf32, #tpu.memory_space<smem>>
    %44 = vector.extract_strided_slice %1 {offsets = [3, 0], sizes = [1, 256], strides = [1, 1]} : vector<4x256xf32> to vector<1x256xf32>
    %45 = vector.broadcast %43 : f32 to vector<1x256xf32>
    %46 = arith.mulf %45, %44 : vector<1x256xf32>
    %47 = arith.addf %42, %46 : vector<1x256xf32>
    %cst_17 = arith.constant 0.000000e+00 : f32
    %48 = vector.broadcast %cst_17 : f32 to vector<1x256xf32>
    %49 = arith.maximumf %47, %48 : vector<1x256xf32>
    %50 = tpu.concatenate %25, %49 in 0 : vector<1x256xf32>, vector<1x256xf32> -> vector<2x256xf32>
    %c0_18 = arith.constant 0 : index
    %c0_19 = arith.constant 0 : index
    %c0_20 = arith.constant 0 : index
    %51 = vector.load %arg5[%c0_18, %c0_19, %c0_20] : memref<1x2x256xf32, #tpu.memory_space<vmem>>, vector<1x2x256xf32>
    %52 = vector.shape_cast %51 : vector<1x2x256xf32> to vector<2x256xf32>
    %53 = vector.shape_cast %50 : vector<2x256xf32> to vector<1x2x256xf32>
    tpu.vector_store %arg5[%c0_18, %c0_19, %c0_20], %53 {strides = array<i32>} : memref<1x2x256xf32, #tpu.memory_space<vmem>>, vector<1x2x256xf32>,
    return
  }
  func.func @transform_0(%arg0: i32, %arg1: i32) -> (i32, i32, i32) {
    %c0_i32 = arith.constant 0 : i32
    %c0_i32_0 = arith.constant 0 : i32
    return %arg0, %c0_i32, %arg1 : i32, i32, i32
  }
  func.func @transform_1(%arg0: i32, %arg1: i32) -> (i32, i32) {
    %c0_i32 = arith.constant 0 : i32
    %c0_i32_0 = arith.constant 0 : i32
    %c0_i32_1 = arith.constant 0 : i32
    return %c0_i32, %c0_i32_0 : i32, i32
  }
  func.func @transform_2(%arg0: i32, %arg1: i32) -> i32 {
    %c0_i32 = arith.constant 0 : i32
    %c0_i32_0 = arith.constant 0 : i32
    return %c0_i32 : i32
  }
  func.func @transform_3(%arg0: i32, %arg1: i32) -> (i32, i32, i32) {
    %c0_i32 = arith.constant 0 : i32
    %c0_i32_0 = arith.constant 0 : i32
    return %arg0, %c0_i32, %arg1 : i32, i32, i32
  }
}

</mosaic_0001>

<bundles_post_ra>
// kernel: tpu_custom_call.1
= control target key start
LH: loop header
LB: loop body
LE: loop exit
PB: predicated region body
PF: predicated region fallthrough
CT: control target
= control target key end

     0   :  { %8 = vsyncpa [#allocation3], 0  ;;  %s963_s0 = inlined_call_operand.hbm [shape: f32[2,4,256], index: 0, kind: input, shape index: {}]   ;;  %s964_s1 = inlined_call_operand.vmem [shape: f32[2,4], index: 1, kind: input, shape index: {}]   ;;  %s965_s2 = inlined_call_operand.vmem [shape: f32[2], index: 2, kind: input, shape index: {}]   ;;  %s966_s3 = inlined_call_operand.hbm [shape: f32[2,2,256], index: 3, kind: output, shape index: {}]  }
   0x1   :  { %10 = vsyncpa [#allocation3 + $0x1], 0 }
   0x2   :  { %11 = vsyncpa [#allocation5], 0 }
   0x3   :  { %12 = vsyncpa [#allocation8], 0 }
   0x4   :  { %13 = vsyncpa [#allocation4], 0 }
   0x5   :  { %15 = vsyncpa [#allocation4 + $0x1], 0  ;;  %s752_s12 = smov 0   ;;  %s754_s13 = smov 0  }
   0x6   :  { %s756_s14 = smov 0   ;;  %s758_s15 = smov 0  }
   0x7   :  { %s760_s16 = smov 0   ;;  %s762_s17 = smov 0  }
   0x8 LB: > { %s457_s18 = sadd.s32 4294967295, %s726_s17   ;;  %s458_s19 = sadd.s32 4294967294, %s726_s17   ;;  %s726_s17 = sphi %s762_s17, %s21_s17   ;;  %s722_s16 = sphi %s760_s16, %s989_s16   ;;  %s718_s15 = sphi %s758_s15, %s988_s15   ;;  %s714_s14 = sphi %s756_s14, %s987_s14   ;;  %s710_s13 = sphi %s754_s13, %s986_s13   ;;  %s706_s12 = sphi %s752_s12, %s985_s12  }
   0x9   : > { %p55_p0 = scmp.ne.s32.totalorder %s710_s13, %s706_s12  ;;  %p786_p1 = scmp.eq.s32.totalorder %s457_s18, 0 }
   0xa   : > { %p790_p2 = scmp.eq.s32.totalorder %s457_s18, 1  ;;  %p129_p3 = scmp.eq.s32.totalorder %s458_s19, 1 }
   0xb   : > { %s971_s20 = scalar_select %p786_p1, 1, 0 }
   0xc   : > { %s972_s21 = scalar_select %p790_p2, 1, 0 }
   0xd   : > { %p796_p4 = por %p786_p1, %p55_p0  ;;  %p459_p5 = scmp.ge.s32.totalorder %s726_s17, 1 }
   0xe   : > { %p801_p6 = por %p129_p3, %p55_p0  ;;  %p136_p7 = scmp.lt.s32.totalorder %s726_s17, 3 }
   0xf   : > { %s973_s22 = scalar_select %p796_p4, 1, 0 }
  0x10   : > { %s974_s23 = scalar_select %p801_p6, 1, 0 }
  0x11   : > { %s149_s26 = sshll.u32 %s964_s1, 4  ;;  %p809_p8 = pnand %p459_p5, %p136_p7  ;;  %s150_s26 = int_to_ptr.vmem [resolvable:$true] %s149_s26 }
  0x12   : > { %s160_s30 = sshll.u32 %s965_s2, 4  ;;  %s576_s5 = scalar_lea.vmem %s150_s26, 32  ;;  %s161_s30 = int_to_ptr.vmem [resolvable:$true] %s160_s30 }
  0x13   : > { %s975_s27 = scalar_select %p809_p8, 1, 0 }
  0x14   : > { %p505_p10 = pneg %p809_p8  ;;  %p577_p12 = scmp.ne.s32.totalorder %s150_s26, %s576_s5 }
  0x15   : > { %p584_p5 = scmp.lt.s32.totalorder %s150_s26, %s150_s26  ;;  %p585_p7 = scmp.lt.s32.totalorder %s576_s5, %s576_s5 }
  0x16   : > { %p821_p11 = pnand %p505_p10, %p786_p1 }
  0x17   : > { %p586_p9 = por %p585_p7, %p584_p5 }
  0x18   : > { %p578_p13 = pneg %p821_p11 }
  0x1a   : > { %p579_p0 = pnand %p578_p13, %p577_p12 }
  0x1c   : > { %p580_p3 = pneg %p579_p0 }
  0x1e   : > { %p587_p6 = pnand %p586_p9, %p580_p3 }
  0x20   : > { %590 = shalt.err (!%p587_p6)
}
  0x21   : > { %s728_s6 = smov [#allocation6]   ;;  %s591_s7 = scalar_lea.vmem %s161_s30, 16 }
  0x22   : > { %508 = dma.vmem_to_smem (!%p821_p11), %s150_s26, 32, %s728_s6, [#allocation5]  }
  0x23   : > { %p592_p10 = scmp.ne.s32.totalorder %s161_s30, %s591_s7  ;;  %p599_p8 = scmp.lt.s32.totalorder %s161_s30, %s161_s30 }
  0x24   : > { %p600_p2 = scmp.lt.s32.totalorder %s591_s7, %s591_s7 }
  0x25   : > { %p594_p1 = pnand %p592_p10, %p578_p13 }
  0x26   : > { %p601_p12 = por %p600_p2, %p599_p8 }
  0x27   : > { %p595_p4 = pneg %p594_p1 }
  0x29   : > { %p602_p0 = pnand %p601_p12, %p595_p4 }
  0x2b   : > { %605 = shalt.err (!%p602_p0)
}
  0x2c   : > { %s729_s8 = smov [#allocation7]   ;;  %s33_s9 = sadd.s32 1, %s722_s16 }
  0x2d   : > { %511 = dma.vmem_to_smem (!%p821_p11), %s161_s30, 16, %s729_s8, [#allocation8]  }
  0x2e   : > { %s42_s10 = sadd.s32 1, %s714_s14  ;;  %p35_p1 = scmp.ge.s32.totalorder %s33_s9, 2 }
  0x2f   : > { %p49_p2 = scmp.ne.s32.totalorder %s714_s14, %s710_s13  ;;  %p50_p4 = scmp.eq.s32.totalorder %s726_s17, 0 }
  0x30   : > { %p522_p6 = scmp.lt.s32.totalorder %s726_s17, 2  ;;  %s991_s9 = smov (%p35_p1, %s33_s9), 0 }
  0x31   : > { %p51_p8 = por %p50_p4, %p49_p2  ;;  %p977_p9 = scmp.ne.s32.totalorder %s972_s21, 0 }
  0x32   : > { %s37_s18 = ssub.s32 %s722_s16, %s991_s9  ;;  %s171_s19 = sand.u32 1, %s714_s14  }
  0x33   : > { %p841_p13 = por %p977_p9, %p49_p2  ;;  %p40_p3 = scmp.eq.s32.totalorder %s37_s18, 0 }
  0x34   : > { %s463_s24 = sshll.u32 %s171_s19, 3  ;;  %s491_s25 = sshll.u32 %s722_s16, 7 }
  0x35   : > { %s850_s26 = scalar_select %p40_p3, %s714_s14, %s42_s10  }
  0x36   : > { %s855_s30 = scalar_lea.hbm %s963_s0, %s491_s25  ;;  %s175_s21 = scalar_lea.vmem [#allocation2], %s463_s24 }
  0x37   : > { %s185_s4 = sshll.u32 %s175_s21, 4  ;;  %p859_p11 = pnand %p522_p6, %p51_p8  ;;  %s863_s4 = int_to_ptr.vmem [resolvable:$true] %s185_s4 }
  0x38   : > { %s172_s6 = scalar_lea.sflag [#allocation3], %s171_s19  ;;  %s606_s7 = scalar_lea.hbm %s855_s30, 128 }
  0x39   : > { %p607_p5 = scmp.ne.s32.totalorder %s855_s30, %s606_s7  ;;  %p608_p7 = pneg %p859_p11 }
  0x3a   : > { %s611_s18 = scalar_lea.hbm %s963_s0, 256  ;;  %p612_p0 = scmp.lt.u32.totalorder %s855_s30, %s963_s0 }
  0x3b   : > { %p609_p10 = pnand %p608_p7, %p607_p5  ;;  %p613_p1 = scmp.lt.u32.totalorder %s611_s18, %s606_s7 }
  0x3c   : > { %p615_p4 = scmp.lt.u32.totalorder %s606_s7, %s855_s30 }
  0x3d   : > { %p610_p12 = pneg %p609_p10  ;;  %p614_p2 = por %p613_p1, %p612_p0 }
  0x3f   : > { %p616_p6 = por %p615_p4, %p614_p2 }
  0x41   : > { %p617_p8 = pnand %p616_p6, %p610_p12 }
  0x43   : > { %620 = shalt.err (!%p617_p8)
}
  0x44   : > { %s621_s19 = scalar_lea.vmem %s863_s4, 128  ;;  %s730_s28 = smov [#allocation2]  }
  0x45   : > { %p622_p9 = scmp.ne.s32.totalorder %s863_s4, %s621_s19  ;;  %s626_s29 = sshll.u32 %s730_s28, 4  ;;  %s627_s29 = int_to_ptr.vmem [resolvable:$false] %s626_s29 }
  0x46   : > { %s628_s21 = scalar_lea.vmem %s627_s29, 256  ;;  %p629_p10 = scmp.lt.s32.totalorder %s863_s4, %s627_s29 }
  0x47   : > { %p624_p3 = pnand %p622_p9, %p608_p7  ;;  %p630_p0 = scmp.lt.s32.totalorder %s628_s21, %s621_s19 }
  0x49   : > { %p625_p5 = pneg %p624_p3  ;;  %p631_p1 = por %p630_p0, %p629_p10 }
  0x4b   : > { %p632_p2 = pnand %p631_p1, %p625_p5 }
  0x4d   : > { %635 = shalt.err (!%p632_p2)
}
  0x4e   : > { %515 = dma.hbm_to_vmem [thread:$0]  (!%p859_p11), %s855_s30, 128, %s863_s4, %s172_s6  }
  0x4f   : > { %p980_p12 = scmp.ne.s32.totalorder %s975_s27, 0 }
  0x50   : > { %s893_s7 = sand.u32 (!%p980_p12), 1, %s710_s13   ;;  %p981_p7 = scmp.ne.s32.totalorder (!%p980_p12), %s973_s22, 0 }
  0x51   : > { %194 = sbr.rel (%p980_p12) target bundleno = 137 (0x89), region = 32  ;;  %s467_s8 = sshll.u32 (!%p980_p12), %s893_s7, 3 }
  0x52   : > { %s197_s10 = scalar_lea.sflag (!%p980_p12), [#allocation3], %s893_s7  ;;  %s200_s18 = scalar_lea.vmem (!%p980_p12), [#allocation2], %s467_s8 }
  0x58   : > { %689 = dma.done.wait (%p981_p7), %s197_s10, 128  }
  0x59   : > { %691 = vsyncadd (%p981_p7), %s197_s10, 4294967168  ;;  %p982_p4 = scmp.ne.s32.totalorder %s971_s20, 0 }
  0x5b   : > { %693 = dma.done.wait (%p982_p4), [#allocation5], 32  }
  0x5c   : > { %695 = vsyncadd (%p982_p4), [#allocation5], 4294967264 }
  0x5d   : > { %697 = dma.done.wait (%p982_p4), [#allocation8], 16  }
  0x5e   : > { %699 = vsyncadd (%p982_p4), [#allocation8], 4294967280 }
  0x5f   : > { %213 = sfence }
  0x60   : > { %s235_s27 = sld [smem:[#allocation7]]  ;;  %s471_s4 = sld [smem:[#allocation6 + $0x1]]  ;;  %v234_v0 = vld [vmem:[%s200_s18] sm:$0xff]  ;;  %v298_v6 = vlaneseq  ;;  %vm319_vm0 = vcmask 1040384  }
  0x61   : > { %s236_s30 = sld [smem:[#allocation6]]  ;;  %s473_s5 = sld [smem:[#allocation6 + $0x2]] }
  0x62   : > { %s475_s6 = sld [smem:[#allocation6 + $0x3]]  ;;  %s477_s22 = sld [smem:[#allocation7 + $0x1]]  ;;  %v299_v22 = vshrl.u32 %v298_v6, 7 }
  0x63   : > { %s478_s24 = sld [smem:[#allocation6 + $0x80]]  ;;  %s479_s25 = sld [smem:[#allocation6 + $0x81]] }
  0x64   : > { %s481_s19 = sld [smem:[#allocation6 + $0x82]]  ;;  %s483_s28 = sld [smem:[#allocation6 + $0x83]]  ;;  %v300_v34 = vsub.s32 0, %v299_v22  ;;  %v304_v35 = vsub.s32 4, %v299_v22 }
  0x65   : > { %s470_s20 = sshll.u32 %s893_s7, 2  ;;  %s492_s8 = sshll.u32 %s718_s15, 6 }
  0x66   : > { %v239_v2 = vstv %s235_s27  ;;  %v242_v4 = vstv %s471_s4  ;;  %s231_s29 = scalar_lea.vmem [#allocation9], %s470_s20  ;;  %s916_s27 = scalar_lea.hbm %s966_s3, %s492_s8 }
  0x67   : > { %v237_v1 = vstv %s236_s30  ;;  %v250_v5 = vstv %s473_s5  ;;  %v243_v7 = vmul.f32 %v242_v4, %v234_v0  ;;  %s351_s21 = sshll.u32 %s231_s29, 4  ;;  %s335_s30 = scalar_lea.sflag [#allocation4], %s893_s7  ;;  %s911_s21 = int_to_ptr.vmem [resolvable:$true] %s351_s21 }
  0x68   : > { %v238_v3 = vmul.f32 %v237_v1, %v234_v0  ;;  %v251_v8 = vmul.f32 %v250_v5, %v234_v0  ;;  %v258_v9 = vstv %s475_s6  ;;  %v270_v10 = vstv %s477_s22  ;;  %s636_s4 = scalar_lea.vmem %s911_s21, 64  ;;  %s731_s15 = smov [#allocation9]  }
  0x69   : > { %v259_v12 = vmul.f32 %v258_v9, %v234_v0  ;;  %v268_v13 = vstv %s478_s24  ;;  %v273_v14 = vstv %s479_s25  ;;  %v472_v15 = vrot.slane %v243_v7, 9  ;;  %p637_p11 = scmp.ne.s32.totalorder %s911_s21, %s636_s4  ;;  %s640_s5 = sshll.u32 %s731_s15, 4  ;;  %s641_s5 = int_to_ptr.vmem [resolvable:$false] %s640_s5 }
  0x6a   : > { %v240_v11 = vadd.f32 %v239_v2, %v238_v3  ;;  %v474_v16 = vrot.slane %v251_v8, 10  ;;  %v269_v17 = vmul.f32 %v268_v13, %v234_v0  ;;  %v274_v18 = vmul.f32 %v273_v14, %v234_v0  ;;  %s642_s6 = scalar_lea.vmem %s641_s5, 128  ;;  %p643_p9 = scmp.lt.s32.totalorder %s911_s21, %s641_s5 }
  0x6b   : > { %v476_v19 = vrot.slane %v259_v12, 11  ;;  %v281_v20 = vstv %s481_s19  ;;  %v289_v21 = vstv %s483_s28  ;;  %p638_p6 = pnand %p637_p11, %p841_p13  ;;  %p644_p3 = scmp.lt.s32.totalorder %s642_s6, %s636_s4 }
  0x6c   : > { %v248_v23 = vadd.f32 %v472_v15, %v240_v11  ;;  %v271_v24 = vadd.f32 %v270_v10, %v269_v17  ;;  %v480_v25 = vrot.slane %v274_v18, 9  ;;  %v282_v26 = vmul.f32 %v281_v20, %v234_v0 }
  0x6d   : > { %v290_v27 = vmul.f32 %v289_v21, %v234_v0  ;;  %p639_p8 = pneg %p638_p6  ;;  %p645_p5 = por %p644_p3, %p643_p9 }
  0x6e   : > { %v256_v28 = vadd.f32 %v474_v16, %v248_v23  ;;  %v279_v29 = vadd.f32 %v480_v25, %v271_v24  ;;  %v482_v30 = vrot.slane %v282_v26, 10 }
  0x6f   : > { %v484_v31 = vrot.slane %v290_v27, 11  ;;  %p646_p10 = pnand %p645_p5, %p639_p8 }
  0x70   : > { %v264_v32 = vadd.f32 %v476_v19, %v256_v28  ;;  %v287_v33 = vadd.f32 %v482_v30, %v279_v29 }
  0x72   : > { %v265_v36 = vmax.f32 %v264_v32, 0.0  ;;  %v295_v37 = vadd.f32 %v484_v31, %v287_v33 }
  0x74   : > { %v296_v38 = vmax.f32 %v295_v37, 0.0  ;;  %v301_v39 = vrot.slane %v265_v36, %v300_v34  ;;  %v305_v40 = vrot.slane %v265_v36, %v304_v35 }
  0x76   : > { %v312_v41 = vrot.slane %v296_v38, %v300_v34  ;;  %v316_v42 = vrot.slane %v296_v38, %v304_v35 }
  0x78   : > { %v320_v43 = vsel %vm319_vm0, %v301_v39, %v312_v41  ;;  %v321_v44 = vsel %vm319_vm0, %v305_v40, %v316_v42 }
  0x79   : > { %v324_v45 = vcombine.low %v320_v43, %v321_v44 }
  0x7b   : > { %485 = vst.sshfl [vmem:[%s231_s29] sm:$0x33 pattern:$0x76325410] %v324_v45 }
  0x7c   : > { %649 = shalt.err (!%p646_p10)
}
  0x7d   : > { %s650_s7 = scalar_lea.hbm %s916_s27, 64  ;;  %s654_s25 = scalar_lea.hbm %s966_s3, 128 }
  0x7e   : > { %p651_p0 = scmp.ne.s32.totalorder %s916_s27, %s650_s7  ;;  %p655_p12 = scmp.lt.u32.totalorder %s916_s27, %s966_s3 }
  0x7f   : > { %p656_p7 = scmp.lt.u32.totalorder %s654_s25, %s650_s7  ;;  %p658_p11 = scmp.lt.u32.totalorder %s650_s7, %s916_s27 }
  0x80   : > { %p652_p1 = pnand %p651_p0, %p841_p13 }
  0x81   : > { %p657_p4 = por %p656_p7, %p655_p12 }
  0x82   : > { %p653_p2 = pneg %p652_p1 }
  0x83   : > { %p659_p6 = por %p658_p11, %p657_p4 }
  0x85   : > { %p660_p8 = pnand %p659_p6, %p653_p2 }
  0x87   : > { %663 = shalt.err (!%p660_p8)
}
  0x88   : > { %503 = dma.vmem_to_hbm [thread:$0]  (%p841_p13), %s911_s21, 64, %s916_s27, %s335_s30  }
  0x89 PF: > { %s363_s20 = sand.u32 1, %s706_s12   ;;  %p983_p9 = scmp.ne.s32.totalorder %s974_s23, 0 }
  0x8a   : > { %p984_p3 = scmp.ge.s32.totalorder %s726_s17, 2  ;;  %s364_s29 = scalar_lea.sflag [#allocation4], %s363_s20 }
  0x8c   : > { %p517_p5 = pnand %p984_p3, %p983_p9 }
  0x8e   : > { %701 = dma.done.wait (!%p517_p5), %s364_s29, 64  }
  0x8f   : > { %703 = vsyncadd (!%p517_p5), %s364_s29, 4294967232  ;;  %s21_s17 = sadd.s32 1, %s726_s17   ;;  %s985_s12 = smov %s710_s13 }
  0x90   : > { %p18_p10 = scmp.ge.s32.totalorder %s21_s17, 4   ;;  %s986_s13 = smov %s714_s14 }
  0x91   : > { %s987_s14 = smov %s850_s26  ;;  %s988_s15 = smov %s722_s16 }
  0x92   : > { %s989_s16 = smov %s991_s9  ;;  %20 = sbr.rel (!%p18_p10) target bundleno = 8 (0x8), region = 86 }
  0x99   :  { %369 = vsyncpa [#allocation3], 1 }
  0x9a   :  { %371 = vsyncpa [#allocation3 + $0x1], 1 }
  0x9b   :  { %372 = vsyncpa [#allocation4], 1 }
  0x9c   :  { %374 = vsyncpa [#allocation4 + $0x1], 1 }
  0x9d   :  { %375 = vsyncpa [#allocation5], 1 }
  0x9e   :  { %377 = vsyncpa [#allocation5 + $0x1], 1 }
  0x9f   :  { %378 = vsyncpa [#allocation8], 1 }

</bundles_post_ra>
